<compile_context>
chip_gen: v7x
topology: tpu7x:2x2x1
jax: 0.10.0
libtpu: 0.0.40
codegen_flags: <defaults>
</compile_context>

<pallas_src>
import functools

import jax
import jax.numpy as jnp
from jax import lax
from jax.experimental import pallas as pl
from jax.experimental.pallas import tpu as pltpu


def _round_up(x, m):
    return ((x + m - 1) // m) * m


def _vmem_capacity_bytes():
    """Physical VMEM per core, with a conservative (v7x-sized) fallback."""
    try:
        info = pltpu.get_tpu_info()
        cap = getattr(info, "vmem_capacity_bytes", None)
        if cap:
            return int(cap)
    except Exception:
        pass
    return 64 << 20


def _fc_kernel(x_ref, w1_ref, b1_ref, g_ref, beta_ref, w2_ref, b2_ref, o_ref,
               *, true_h):
    # x_ref: (TM, D_in_p)   w1_ref: (D_in_p, H_p)   b1/g/beta: (1, H_p)
    # w2_ref: (H_p, D_out_p)  b2_ref: (1, D_out_p)  o_ref: (TM, D_out_p)

    # dense1: native-dtype MXU matmul, f32 accumulate.
    h = jnp.dot(x_ref[...], w1_ref[...], preferred_element_type=jnp.float32)
    h = h + b1_ref[...].astype(jnp.float32)

    # dropout (p=0.2) is identity in eval mode.
    # TODO(synk): training-mode dropout mask (pltpu.prng_seed/prng_random_bits)
    # not implemented.

    # exact GELU: 0.5 * h * (1 + erf(h / sqrt(2)))  (matches torch.nn.GELU()).
    h = 0.5 * h * (1.0 + lax.erf(h * jnp.float32(0.7071067811865476)))

    # LayerNorm over the TRUE hidden dim (eps=1e-5).  Padded hidden columns of
    # h are exactly zero, so single-pass stats with divisor 1/true_h are exact:
    #   mean = sum(h)/true_h,  var = sum(h^2)/true_h - mean^2.
    inv_h = jnp.float32(1.0 / true_h)
    s1 = jnp.sum(h, axis=-1, keepdims=True)
    s2 = jnp.sum(h * h, axis=-1, keepdims=True)
    mean = s1 * inv_h
    var = s2 * inv_h - mean * mean
    hn = (h - mean) * lax.rsqrt(var + jnp.float32(1e-5))
    hn = hn * g_ref[...].astype(jnp.float32) + beta_ref[...].astype(jnp.float32)

    # dense2: cast activation to the weight dtype (f32 no-op / bf16 MXU path),
    # f32 accumulate.  Padded gamma/beta and padded W2 rows are zero, so the
    # padded hidden columns contribute nothing.
    y = jnp.dot(hn.astype(w2_ref.dtype), w2_ref[...],
                preferred_element_type=jnp.float32)
    y = y + b2_ref[...].astype(jnp.float32)
    o_ref[...] = y.astype(o_ref.dtype)


def prepare_fc_params(w1, b1, gamma, beta, w2, b2):
    """One-time zero-padding of the parameters to lane-dense shapes.

    Do this once per parameter set (outside the per-call path) so the hot path
    never re-pads the weights.
    """
    D_in, H = w1.shape
    D_out = w2.shape[1]
    D_in_p = _round_up(D_in, 128)
    H_p = _round_up(H, 128)
    D_out_p = _round_up(D_out, 128)
    w1_p = jnp.pad(w1, ((0, D_in_p - D_in), (0, H_p - H)))
    b1_p = jnp.pad(b1, (0, H_p - H)).reshape(1, H_p)
    g_p = jnp.pad(gamma, (0, H_p - H)).reshape(1, H_p)
    bt_p = jnp.pad(beta, (0, H_p - H)).reshape(1, H_p)
    w2_p = jnp.pad(w2, ((0, H_p - H), (0, D_out_p - D_out)))
    b2_p = jnp.pad(b2, (0, D_out_p - D_out)).reshape(1, D_out_p)
    return (w1_p, b1_p, g_p, bt_p, w2_p, b2_p), (H, D_out)


@functools.partial(
    jax.jit,
    static_argnames=("true_h", "true_d_out", "tm", "single_buffer_weights"))
def _fc_forward(x, w1_p, b1_p, g_p, bt_p, w2_p, b2_p, *, true_h, true_d_out,
                tm, single_buffer_weights):
    B, S, D_in = x.shape
    D_in_p, H_p = w1_p.shape
    D_out_p = w2_p.shape[1]
    M = B * S
    x_isz = jnp.dtype(x.dtype).itemsize
    w_isz = jnp.dtype(w1_p.dtype).itemsize

    # Generation-aware caps: <=~56 MiB on 64 MiB/TC parts (v7x), <=~100 MiB on
    # 128 MiB parts (v5e/v6e).  Bigger default row tiles where VMEM allows.
    phys = _vmem_capacity_bytes()
    small_vmem = phys <= (64 << 20)
    vmem_cap = (56 << 20) if small_vmem else (100 << 20)
    if tm is None:
        tm = 256 if small_vmem else 512

    # Row tile: multiple of 8 sublanes, at most `tm`.
    tm_eff = min(tm, _round_up(M, 8))
    # v7x megacore: make sure the "parallel" row axis has >= 2 grid steps so
    # both TensorCores get work (one extra ~0.35us step is harmless on 1-TC chips).
    if pl.cdiv(M, tm_eff) <= 1 and M >= 16:
        tm_eff = _round_up(pl.cdiv(M, 2), 8)

    n_wbuf = 1 if single_buffer_weights else 2

    def _footprint(tm_e):
        io = 2 * tm_e * (D_in_p + D_out_p) * x_isz            # double-buffered x / out tiles
        w = n_wbuf * (D_in_p * H_p + H_p * D_out_p) * w_isz   # resident weights
        small = n_wbuf * (3 * 8 * H_p + 8 * D_out_p) * w_isz  # (1, lanes) params pad to 8 sublanes
        interm = tm_e * (2 * H_p + D_out_p) * 4                # f32 h / hn / y live values
        return io + w + small + interm

    # Residency guard (matters on v7x): shrink the row tile until it fits.
    while _footprint(tm_eff) > vmem_cap and tm_eff > 64:
        tm_eff = max(64, _round_up(tm_eff // 2, 8))
    # TODO(synk): if the weights alone exceed vmem_cap (very wide layers on
    # v7x), tile W2 along D_out / add an "arbitrary" K axis with an f32
    # accumulator scratch (or cast weights to bf16) instead of only shrinking tm.

    vmem_limit = int(min(vmem_cap, max(int(_footprint(tm_eff) * 1.25), 16 << 20)))

    # Lane-dense x loads; pad columns only when needed (zero cols x zero W1
    # rows contribute nothing).  No M padding: ragged last block is handled by
    # the grid (extra rows discarded on writeback).
    x2 = x.reshape(M, D_in)
    if D_in_p != D_in:
        x2 = jnp.pad(x2, ((0, 0), (0, D_in_p - D_in)))

    def _resident(shape):
        idx = lambda i, _n=len(shape): (0,) * _n
        if single_buffer_weights:
            # Grid-invariant operand: single buffer (DMA only happens once).
            return pl.BlockSpec(shape, idx, pipeline_mode=pl.Buffered(1))
        return pl.BlockSpec(shape, idx)

    out = pl.pallas_call(
        functools.partial(_fc_kernel, true_h=true_h),
        out_shape=jax.ShapeDtypeStruct((M, D_out_p), x.dtype),
        grid_spec=pltpu.PrefetchScalarGridSpec(
            num_scalar_prefetch=0,
            grid=(pl.cdiv(M, tm_eff),),
            in_specs=[
                pl.BlockSpec((tm_eff, D_in_p), lambda i: (i, 0)),  # x rows
                _resident((D_in_p, H_p)),                          # W1
                _resident((1, H_p)),                               # b1
                _resident((1, H_p)),                               # gamma
                _resident((1, H_p)),                               # beta
                _resident((H_p, D_out_p)),                         # W2
                _resident((1, D_out_p)),                           # b2
            ],
            out_specs=pl.BlockSpec((tm_eff, D_out_p), lambda i: (i, 0)),
        ),
        compiler_params=pltpu.CompilerParams(
            dimension_semantics=("parallel",),
            vmem_limit_bytes=vmem_limit),
    )(x2, w1_p, b1_p, g_p, bt_p, w2_p, b2_p)

    if D_out_p != true_d_out:
        out = out[:, :true_d_out]
    return out.reshape(B, S, true_d_out)


def representation_layer_fc(x, w1, b1, gamma, beta, w2, b2, *, tm=None):
    """x: [B, S, D_in] -> [B, S, D_out]  (type='FC' RepresentationLayer)."""
    params, (H, D_out) = prepare_fc_params(w1, b1, gamma, beta, w2, b2)
    try:
        return _fc_forward(x, *params, true_h=H, true_d_out=D_out, tm=tm,
                           single_buffer_weights=True)
    except Exception:
        # Narrow fallback: if this jax build rejects pipeline_mode=pl.Buffered,
        # fall back to default double-buffered weights (correct, more VMEM).
        return _fc_forward(x, *params, true_h=H, true_d_out=D_out, tm=tm,
                           single_buffer_weights=False)


def _reference(x, w1, b1, gamma, beta, w2, b2):
    h = jnp.einsum("bsd,dh->bsh", x, w1) + b1
    h = 0.5 * h * (1.0 + lax.erf(h / jnp.sqrt(2.0)))
    mean = jnp.mean(h, axis=-1, keepdims=True)
    var = jnp.mean(jnp.square(h - mean), axis=-1, keepdims=True)
    h = (h - mean) / jnp.sqrt(var + 1e-5) * gamma + beta
    return jnp.einsum("bsh,ho->bso", h, w2) + b2


if __name__ == "__main__":
    # Small shapes consistent with the module: batch=2, seq=8,
    # input_dim=32, hidden_dim=64, output_dim=32.
    B, S, D_IN, HID, D_OUT = 2, 8, 32, 64, 32

    key = jax.random.PRNGKey(0)
    k_x, k_w1, k_b1, k_w2, k_b2 = jax.random.split(key, 5)

    x = jax.random.normal(k_x, (B, S, D_IN), dtype=jnp.float32)

    # Deterministic parameter init (Linear-style uniform fan-in scaling).
    lim1 = 1.0 / (D_IN ** 0.5)
    w1 = jax.random.uniform(k_w1, (D_IN, HID), minval=-lim1, maxval=lim1,
                            dtype=jnp.float32)
    b1 = jax.random.uniform(k_b1, (HID,), minval=-lim1, maxval=lim1,
                            dtype=jnp.float32)
    lim2 = 1.0 / (HID ** 0.5)
    w2 = jax.random.uniform(k_w2, (HID, D_OUT), minval=-lim2, maxval=lim2,
                            dtype=jnp.float32)
    b2 = jax.random.uniform(k_b2, (D_OUT,), minval=-lim2, maxval=lim2,
                            dtype=jnp.float32)
    gamma = jnp.ones((HID,), jnp.float32)   # LayerNorm weight init
    beta = jnp.zeros((HID,), jnp.float32)   # LayerNorm bias init

    y = representation_layer_fc(x, w1, b1, gamma, beta, w2, b2)
    y = jax.block_until_ready(y)

    y_ref = _reference(x, w1, b1, gamma, beta, w2, b2)
    assert y.shape == (B, S, D_OUT)
    assert jnp.allclose(y, y_ref, atol=1e-4, rtol=1e-4)

    print("KERNEL_OK")
</pallas_src>

<mosaic_0001>
module attributes {stable_mosaic.version = 11 : i64} {
  func.func @_fc_kernel(%arg0: i32, %arg1: memref<8x128xf32, #tpu.memory_space<vmem>>, %arg2: memref<128x128xf32, #tpu.memory_space<vmem>>, %arg3: memref<1x128xf32, #tpu.memory_space<vmem>>, %arg4: memref<1x128xf32, #tpu.memory_space<vmem>>, %arg5: memref<1x128xf32, #tpu.memory_space<vmem>>, %arg6: memref<128x128xf32, #tpu.memory_space<vmem>>, %arg7: memref<1x128xf32, #tpu.memory_space<vmem>>, %arg8: memref<8x128xf32, #tpu.memory_space<vmem>>) attributes {dimension_semantics = [#tpu.dimension_semantics<parallel>], iteration_bounds = array<i64: 2>, scalar_prefetch = 0 : i64, scratch_operands = 0 : i64, tpu.core_type = #tpu.core_type<tc>, window_params = [{transform_indices = @transform_0, window_bounds = array<i64: 8, 128>}, {pipeline_mode = #tpu.pipeline_mode<synchronous>, transform_indices = @transform_1, window_bounds = array<i64: 128, 128>}, {pipeline_mode = #tpu.pipeline_mode<synchronous>, transform_indices = @transform_2, window_bounds = array<i64: 1, 128>}, {pipeline_mode = #tpu.pipeline_mode<synchronous>, transform_indices = @transform_3, window_bounds = array<i64: 1, 128>}, {pipeline_mode = #tpu.pipeline_mode<synchronous>, transform_indices = @transform_4, window_bounds = array<i64: 1, 128>}, {pipeline_mode = #tpu.pipeline_mode<synchronous>, transform_indices = @transform_5, window_bounds = array<i64: 128, 128>}, {pipeline_mode = #tpu.pipeline_mode<synchronous>, transform_indices = @transform_6, window_bounds = array<i64: 1, 128>}, {transform_indices = @transform_7, window_bounds = array<i64: 8, 128>}]} {
    %c0 = arith.constant 0 : index
    %c0_0 = arith.constant 0 : index
    %0 = vector.load %arg1[%c0, %c0_0] : memref<8x128xf32, #tpu.memory_space<vmem>>, vector<8x128xf32>
    %c0_1 = arith.constant 0 : index
    %c0_2 = arith.constant 0 : index
    %1 = vector.load %arg2[%c0_1, %c0_2] : memref<128x128xf32, #tpu.memory_space<vmem>>, vector<128x128xf32>
    %cst = arith.constant dense<0.000000e+00> : vector<8x128xf32>
    %2 = tpu.matmul %0, %1, %cst {dimension_numbers = #tpu.dot_dimension_numbers<[1], [0], [0], [1], [0, 0, 1, 1], [], []>} : vector<8x128xf32>, vector<128x128xf32>, vector<8x128xf32> -> vector<8x128xf32>
    %c0_3 = arith.constant 0 : index
    %c0_4 = arith.constant 0 : index
    %3 = vector.load %arg3[%c0_3, %c0_4] : memref<1x128xf32, #tpu.memory_space<vmem>>, vector<1x128xf32>
    %4 = vector.broadcast %3 : vector<1x128xf32> to vector<8x128xf32>
    %5 = arith.addf %2, %4 : vector<8x128xf32>
    %cst_5 = arith.constant 5.000000e-01 : f32
    %6 = vector.broadcast %cst_5 : f32 to vector<8x128xf32>
    %7 = arith.mulf %6, %5 : vector<8x128xf32>
    %cst_6 = arith.constant 0.707106769 : f32
    %8 = vector.broadcast %cst_6 : f32 to vector<8x128xf32>
    %9 = arith.mulf %5, %8 : vector<8x128xf32>
    %10 = math.erf %9 : vector<8x128xf32>
    %cst_7 = arith.constant 1.000000e+00 : f32
    %11 = vector.broadcast %cst_7 : f32 to vector<8x128xf32>
    %12 = arith.addf %11, %10 : vector<8x128xf32>
    %13 = arith.mulf %7, %12 : vector<8x128xf32>
    %cst_8 = arith.constant dense<0.000000e+00> : vector<8xf32>
    %14 = vector.multi_reduction <add>, %13, %cst_8 [1] : vector<8x128xf32> to vector<8xf32>
    %15 = vector.shape_cast %14 : vector<8xf32> to vector<8x1xf32>
    %16 = arith.mulf %13, %13 : vector<8x128xf32>
    %cst_9 = arith.constant dense<0.000000e+00> : vector<8xf32>
    %17 = vector.multi_reduction <add>, %16, %cst_9 [1] : vector<8x128xf32> to vector<8xf32>
    %18 = vector.shape_cast %17 : vector<8xf32> to vector<8x1xf32>
    %cst_10 = arith.constant 1.562500e-02 : f32
    %19 = vector.broadcast %cst_10 : f32 to vector<8x1xf32>
    %20 = arith.mulf %15, %19 : vector<8x1xf32>
    %cst_11 = arith.constant 1.562500e-02 : f32
    %21 = vector.broadcast %cst_11 : f32 to vector<8x1xf32>
    %22 = arith.mulf %18, %21 : vector<8x1xf32>
    %23 = arith.mulf %20, %20 : vector<8x1xf32>
    %24 = arith.subf %22, %23 : vector<8x1xf32>
    %25 = vector.broadcast %20 : vector<8x1xf32> to vector<8x128xf32>
    %26 = arith.subf %13, %25 : vector<8x128xf32>
    %cst_12 = arith.constant 9.99999974E-6 : f32
    %27 = vector.broadcast %cst_12 : f32 to vector<8x1xf32>
    %28 = arith.addf %24, %27 : vector<8x1xf32>
    %29 = math.rsqrt %28 : vector<8x1xf32>
    %30 = vector.broadcast %29 : vector<8x1xf32> to vector<8x128xf32>
    %31 = arith.mulf %26, %30 : vector<8x128xf32>
    %c0_13 = arith.constant 0 : index
    %c0_14 = arith.constant 0 : index
    %32 = vector.load %arg4[%c0_13, %c0_14] : memref<1x128xf32, #tpu.memory_space<vmem>>, vector<1x128xf32>
    %33 = vector.broadcast %32 : vector<1x128xf32> to vector<8x128xf32>
    %34 = arith.mulf %31, %33 : vector<8x128xf32>
    %c0_15 = arith.constant 0 : index
    %c0_16 = arith.constant 0 : index
    %35 = vector.load %arg5[%c0_15, %c0_16] : memref<1x128xf32, #tpu.memory_space<vmem>>, vector<1x128xf32>
    %36 = vector.broadcast %35 : vector<1x128xf32> to vector<8x128xf32>
    %37 = arith.addf %34, %36 : vector<8x128xf32>
    %c0_17 = arith.constant 0 : index
    %c0_18 = arith.constant 0 : index
    %38 = vector.load %arg6[%c0_17, %c0_18] : memref<128x128xf32, #tpu.memory_space<vmem>>, vector<128x128xf32>
    %cst_19 = arith.constant dense<0.000000e+00> : vector<8x128xf32>
    %39 = tpu.matmul %37, %38, %cst_19 {dimension_numbers = #tpu.dot_dimension_numbers<[1], [0], [0], [1], [0, 0, 1, 1], [], []>} : vector<8x128xf32>, vector<128x128xf32>, vector<8x128xf32> -> vector<8x128xf32>
    %c0_20 = arith.constant 0 : index
    %c0_21 = arith.constant 0 : index
    %40 = vector.load %arg7[%c0_20, %c0_21] : memref<1x128xf32, #tpu.memory_space<vmem>>, vector<1x128xf32>
    %41 = vector.broadcast %40 : vector<1x128xf32> to vector<8x128xf32>
    %42 = arith.addf %39, %41 : vector<8x128xf32>
    %c0_22 = arith.constant 0 : index
    %c0_23 = arith.constant 0 : index
    %43 = vector.load %arg8[%c0_22, %c0_23] : memref<8x128xf32, #tpu.memory_space<vmem>>, vector<8x128xf32>
    tpu.vector_store %arg8[%c0_22, %c0_23], %42 {strides = array<i32>} : memref<8x128xf32, #tpu.memory_space<vmem>>, vector<8x128xf32>,
    return
  }
  func.func @transform_0(%arg0: i32) -> (i32, i32) {
    %c0_i32 = arith.constant 0 : i32
    %c0_i32_0 = arith.constant 0 : i32
    return %arg0, %c0_i32 : i32, i32
  }
  func.func @transform_1(%arg0: i32) -> (i32, i32) {
    %c0_i32 = arith.constant 0 : i32
    %c0_i32_0 = arith.constant 0 : i32
    %c0_i32_1 = arith.constant 0 : i32
    return %c0_i32, %c0_i32_0 : i32, i32
  }
  func.func @transform_2(%arg0: i32) -> (i32, i32) {
    %c0_i32 = arith.constant 0 : i32
    %c0_i32_0 = arith.constant 0 : i32
    %c0_i32_1 = arith.constant 0 : i32
    return %c0_i32, %c0_i32_0 : i32, i32
  }
  func.func @transform_3(%arg0: i32) -> (i32, i32) {
    %c0_i32 = arith.constant 0 : i32
    %c0_i32_0 = arith.constant 0 : i32
    %c0_i32_1 = arith.constant 0 : i32
    return %c0_i32, %c0_i32_0 : i32, i32
  }
  func.func @transform_4(%arg0: i32) -> (i32, i32) {
    %c0_i32 = arith.constant 0 : i32
    %c0_i32_0 = arith.constant 0 : i32
    %c0_i32_1 = arith.constant 0 : i32
    return %c0_i32, %c0_i32_0 : i32, i32
  }
  func.func @transform_5(%arg0: i32) -> (i32, i32) {
    %c0_i32 = arith.constant 0 : i32
    %c0_i32_0 = arith.constant 0 : i32
    %c0_i32_1 = arith.constant 0 : i32
    return %c0_i32, %c0_i32_0 : i32, i32
  }
  func.func @transform_6(%arg0: i32) -> (i32, i32) {
    %c0_i32 = arith.constant 0 : i32
    %c0_i32_0 = arith.constant 0 : i32
    %c0_i32_1 = arith.constant 0 : i32
    return %c0_i32, %c0_i32_0 : i32, i32
  }
  func.func @transform_7(%arg0: i32) -> (i32, i32) {
    %c0_i32 = arith.constant 0 : i32
    %c0_i32_0 = arith.constant 0 : i32
    return %arg0, %c0_i32 : i32, i32
  }
}

module attributes {stable_mosaic.version = 11 : i64} {
  func.func @_fc_kernel(%arg0: i32, %arg1: memref<8x128xf32, #tpu.memory_space<vmem>>, %arg2: memref<128x128xf32, #tpu.memory_space<vmem>>, %arg3: memref<1x128xf32, #tpu.memory_space<vmem>>, %arg4: memref<1x128xf32, #tpu.memory_space<vmem>>, %arg5: memref<1x128xf32, #tpu.memory_space<vmem>>, %arg6: memref<128x128xf32, #tpu.memory_space<vmem>>, %arg7: memref<1x128xf32, #tpu.memory_space<vmem>>, %arg8: memref<8x128xf32, #tpu.memory_space<vmem>>) attributes {dimension_semantics = [#tpu.dimension_semantics<parallel>], iteration_bounds = array<i64: 2>, scalar_prefetch = 0 : i64, scratch_operands = 0 : i64, tpu.core_type = #tpu.core_type<tc>, window_params = [{transform_indices = @transform_0, window_bounds = array<i64: 8, 128>}, {pipeline_mode = #tpu.pipeline_mode<synchronous>, transform_indices = @transform_1, window_bounds = array<i64: 128, 128>}, {pipeline_mode = #tpu.pipeline_mode<synchronous>, transform_indices = @transform_2, window_bounds = array<i64: 1, 128>}, {pipeline_mode = #tpu.pipeline_mode<synchronous>, transform_indices = @transform_3, window_bounds = array<i64: 1, 128>}, {pipeline_mode = #tpu.pipeline_mode<synchronous>, transform_indices = @transform_4, window_bounds = array<i64: 1, 128>}, {pipeline_mode = #tpu.pipeline_mode<synchronous>, transform_indices = @transform_5, window_bounds = array<i64: 128, 128>}, {pipeline_mode = #tpu.pipeline_mode<synchronous>, transform_indices = @transform_6, window_bounds = array<i64: 1, 128>}, {transform_indices = @transform_7, window_bounds = array<i64: 8, 128>}]} {
    %c0 = arith.constant 0 : index
    %c0_0 = arith.constant 0 : index
    %0 = vector.load %arg1[%c0, %c0_0] : memref<8x128xf32, #tpu.memory_space<vmem>>, vector<8x128xf32>
    %c0_1 = arith.constant 0 : index
    %c0_2 = arith.constant 0 : index
    %1 = vector.load %arg2[%c0_1, %c0_2] : memref<128x128xf32, #tpu.memory_space<vmem>>, vector<128x128xf32>
    %cst = arith.constant dense<0.000000e+00> : vector<8x128xf32>
    %2 = tpu.matmul %0, %1, %cst {dimension_numbers = #tpu.dot_dimension_numbers<[1], [0], [0], [1], [0, 0, 1, 1], [], []>} : vector<8x128xf32>, vector<128x128xf32>, vector<8x128xf32> -> vector<8x128xf32>
    %c0_3 = arith.constant 0 : index
    %c0_4 = arith.constant 0 : index
    %3 = vector.load %arg3[%c0_3, %c0_4] : memref<1x128xf32, #tpu.memory_space<vmem>>, vector<1x128xf32>
    %4 = vector.broadcast %3 : vector<1x128xf32> to vector<8x128xf32>
    %5 = arith.addf %2, %4 : vector<8x128xf32>
    %cst_5 = arith.constant 5.000000e-01 : f32
    %6 = vector.broadcast %cst_5 : f32 to vector<8x128xf32>
    %7 = arith.mulf %6, %5 : vector<8x128xf32>
    %cst_6 = arith.constant 0.707106769 : f32
    %8 = vector.broadcast %cst_6 : f32 to vector<8x128xf32>
    %9 = arith.mulf %5, %8 : vector<8x128xf32>
    %10 = math.erf %9 : vector<8x128xf32>
    %cst_7 = arith.constant 1.000000e+00 : f32
    %11 = vector.broadcast %cst_7 : f32 to vector<8x128xf32>
    %12 = arith.addf %11, %10 : vector<8x128xf32>
    %13 = arith.mulf %7, %12 : vector<8x128xf32>
    %cst_8 = arith.constant dense<0.000000e+00> : vector<8xf32>
    %14 = vector.multi_reduction <add>, %13, %cst_8 [1] : vector<8x128xf32> to vector<8xf32>
    %15 = vector.shape_cast %14 : vector<8xf32> to vector<8x1xf32>
    %16 = arith.mulf %13, %13 : vector<8x128xf32>
    %cst_9 = arith.constant dense<0.000000e+00> : vector<8xf32>
    %17 = vector.multi_reduction <add>, %16, %cst_9 [1] : vector<8x128xf32> to vector<8xf32>
    %18 = vector.shape_cast %17 : vector<8xf32> to vector<8x1xf32>
    %cst_10 = arith.constant 1.562500e-02 : f32
    %19 = vector.broadcast %cst_10 : f32 to vector<8x1xf32>
    %20 = arith.mulf %15, %19 : vector<8x1xf32>
    %cst_11 = arith.constant 1.562500e-02 : f32
    %21 = vector.broadcast %cst_11 : f32 to vector<8x1xf32>
    %22 = arith.mulf %18, %21 : vector<8x1xf32>
    %23 = arith.mulf %20, %20 : vector<8x1xf32>
    %24 = arith.subf %22, %23 : vector<8x1xf32>
    %25 = vector.broadcast %20 : vector<8x1xf32> to vector<8x128xf32>
    %26 = arith.subf %13, %25 : vector<8x128xf32>
    %cst_12 = arith.constant 9.99999974E-6 : f32
    %27 = vector.broadcast %cst_12 : f32 to vector<8x1xf32>
    %28 = arith.addf %24, %27 : vector<8x1xf32>
    %29 = math.rsqrt %28 : vector<8x1xf32>
    %30 = vector.broadcast %29 : vector<8x1xf32> to vector<8x128xf32>
    %31 = arith.mulf %26, %30 : vector<8x128xf32>
    %c0_13 = arith.constant 0 : index
    %c0_14 = arith.constant 0 : index
    %32 = vector.load %arg4[%c0_13, %c0_14] : memref<1x128xf32, #tpu.memory_space<vmem>>, vector<1x128xf32>
    %33 = vector.broadcast %32 : vector<1x128xf32> to vector<8x128xf32>
    %34 = arith.mulf %31, %33 : vector<8x128xf32>
    %c0_15 = arith.constant 0 : index
    %c0_16 = arith.constant 0 : index
    %35 = vector.load %arg5[%c0_15, %c0_16] : memref<1x128xf32, #tpu.memory_space<vmem>>, vector<1x128xf32>
    %36 = vector.broadcast %35 : vector<1x128xf32> to vector<8x128xf32>
    %37 = arith.addf %34, %36 : vector<8x128xf32>
    %c0_17 = arith.constant 0 : index
    %c0_18 = arith.constant 0 : index
    %38 = vector.load %arg6[%c0_17, %c0_18] : memref<128x128xf32, #tpu.memory_space<vmem>>, vector<128x128xf32>
    %cst_19 = arith.constant dense<0.000000e+00> : vector<8x128xf32>
    %39 = tpu.matmul %37, %38, %cst_19 {dimension_numbers = #tpu.dot_dimension_numbers<[1], [0], [0], [1], [0, 0, 1, 1], [], []>} : vector<8x128xf32>, vector<128x128xf32>, vector<8x128xf32> -> vector<8x128xf32>
    %c0_20 = arith.constant 0 : index
    %c0_21 = arith.constant 0 : index
    %40 = vector.load %arg7[%c0_20, %c0_21] : memref<1x128xf32, #tpu.memory_space<vmem>>, vector<1x128xf32>
    %41 = vector.broadcast %40 : vector<1x128xf32> to vector<8x128xf32>
    %42 = arith.addf %39, %41 : vector<8x128xf32>
    %c0_22 = arith.constant 0 : index
    %c0_23 = arith.constant 0 : index
    %43 = vector.load %arg8[%c0_22, %c0_23] : memref<8x128xf32, #tpu.memory_space<vmem>>, vector<8x128xf32>
    tpu.vector_store %arg8[%c0_22, %c0_23], %42 {strides = array<i32>} : memref<8x128xf32, #tpu.memory_space<vmem>>, vector<8x128xf32>,
    return
  }
  func.func @transform_0(%arg0: i32) -> (i32, i32) {
    %c0_i32 = arith.constant 0 : i32
    %c0_i32_0 = arith.constant 0 : i32
    return %arg0, %c0_i32 : i32, i32
  }
  func.func @transform_1(%arg0: i32) -> (i32, i32) {
    %c0_i32 = arith.constant 0 : i32
    %c0_i32_0 = arith.constant 0 : i32
    %c0_i32_1 = arith.constant 0 : i32
    return %c0_i32, %c0_i32_0 : i32, i32
  }
  func.func @transform_2(%arg0: i32) -> (i32, i32) {
    %c0_i32 = arith.constant 0 : i32
    %c0_i32_0 = arith.constant 0 : i32
    %c0_i32_1 = arith.constant 0 : i32
    return %c0_i32, %c0_i32_0 : i32, i32
  }
  func.func @transform_3(%arg0: i32) -> (i32, i32) {
    %c0_i32 = arith.constant 0 : i32
    %c0_i32_0 = arith.constant 0 : i32
    %c0_i32_1 = arith.constant 0 : i32
    return %c0_i32, %c0_i32_0 : i32, i32
  }
  func.func @transform_4(%arg0: i32) -> (i32, i32) {
    %c0_i32 = arith.constant 0 : i32
    %c0_i32_0 = arith.constant 0 : i32
    %c0_i32_1 = arith.constant 0 : i32
    return %c0_i32, %c0_i32_0 : i32, i32
  }
  func.func @transform_5(%arg0: i32) -> (i32, i32) {
    %c0_i32 = arith.constant 0 : i32
    %c0_i32_0 = arith.constant 0 : i32
    %c0_i32_1 = arith.constant 0 : i32
    return %c0_i32, %c0_i32_0 : i32, i32
  }
  func.func @transform_6(%arg0: i32) -> (i32, i32) {
    %c0_i32 = arith.constant 0 : i32
    %c0_i32_0 = arith.constant 0 : i32
    %c0_i32_1 = arith.constant 0 : i32
    return %c0_i32, %c0_i32_0 : i32, i32
  }
  func.func @transform_7(%arg0: i32) -> (i32, i32) {
    %c0_i32 = arith.constant 0 : i32
    %c0_i32_0 = arith.constant 0 : i32
    return %arg0, %c0_i32 : i32, i32
  }
}

</mosaic_0001>

<bundles_post_ra>
// kernel: _fc_forward.1
= control target key start
LH: loop header
LB: loop body
LE: loop exit
PB: predicated region body
PF: predicated region fallthrough
CT: control target
= control target key end

     0   :  { %12 = vsyncpa [#allocation3], 0  ;;  %s1055_s0 = inlined_call_operand.vmem [shape: f32[16,128], index: 0, kind: input, shape index: {}]   ;;  %s1056_s1 = inlined_call_operand.hbm [shape: f32[128,128], index: 1, kind: input, shape index: {}]   ;;  %s1057_s2 = inlined_call_operand.vmem [shape: f32[1,128], index: 2, kind: input, shape index: {}]   ;;  %s1058_s3 = inlined_call_operand.vmem [shape: f32[1,128], index: 3, kind: input, shape index: {}]   ;;  %s1059_s4 = inlined_call_operand.vmem [shape: f32[1,128], index: 4, kind: input, shape index: {}]   ;;  %s1060_s5 = inlined_call_operand.hbm [shape: f32[128,128], index: 5, kind: input, shape index: {}]   ;;  %s1061_s6 = inlined_call_operand.vmem [shape: f32[1,128], index: 6, kind: input, shape index: {}]   ;;  %s1062_s7 = inlined_call_operand.vmem [shape: f32[16,128], index: 7, kind: output, shape index: {}]  }
   0x1   :  { %13 = vsyncpa [#allocation5], 0  ;;  %s927_s24 = smov 0  }
   0x2 LB: > { %s933_s25 = sadd.s32 4294967295, %s878_s24   ;;  %p603_p0 = scmp.ge.s32.totalorder %s878_s24, 1  ;;  %s878_s24 = sphi %s927_s24, %s19_s24  }
   0x3   : > { %p202_p1 = scmp.lt.s32.totalorder %s878_s24, 3  ;;  %s880_s26 = smov [#allocation2]  }
   0x4   : > { %s214_s27 = sshll.u32 %s880_s26, 4  ;;  %p1063_p3 = scmp.eq.s32.totalorder %s933_s25, 0  ;;  %s215_s27 = int_to_ptr.vmem [resolvable:$true] %s214_s27 }
   0x5   : > { %p937_p2 = pnand %p603_p0, %p202_p1  ;;  %s881_s29 = smov [#allocation4]  }
   0x6   : > { %s236_s30 = sshll.u32 %s881_s29, 4  ;;  %s808_s11 = scalar_lea.hbm %s1056_s1, 2048  ;;  %s950_s30 = int_to_ptr.vmem [resolvable:$true] %s236_s30 }
   0x7   : > { %s1065_s28 = scalar_select %p937_p2, 1, 0 }
   0x8   : > { %p778_p4 = pneg %p937_p2  ;;  %p809_p6 = scmp.ne.s32.totalorder %s1056_s1, %s808_s11 }
   0x9   : > { %p815_p10 = scmp.lt.u32.totalorder %s808_s11, %s1056_s1 }
   0xa   : > { %p946_p5 = pnand %p1063_p3, %p778_p4 }
   0xc   : > { %p810_p7 = pneg %p946_p5 }
   0xe   : > { %p811_p8 = pnand %p810_p7, %p809_p6 }
  0x10   : > { %p812_p9 = pneg %p811_p8 }
  0x12   : > { %p817_p11 = pnand %p815_p10, %p812_p9 }
  0x14   : > { %820 = shalt.err (!%p817_p11)
}
  0x15   : > { %s821_s16 = scalar_lea.vmem %s215_s27, 2048  ;;  %p829_p1 = scmp.lt.s32.totalorder %s215_s27, %s215_s27 }
  0x16   : > { %p822_p12 = scmp.ne.s32.totalorder %s215_s27, %s821_s16  ;;  %p830_p4 = scmp.lt.s32.totalorder %s821_s16, %s821_s16 }
  0x18   : > { %p824_p13 = pnand %p822_p12, %p810_p7  ;;  %p831_p3 = por %p830_p4, %p829_p1 }
  0x1a   : > { %p825_p0 = pneg %p824_p13 }
  0x1c   : > { %p832_p2 = pnand %p831_p3, %p825_p0 }
  0x1e   : > { %835 = shalt.err (!%p832_p2)
}
  0x1f   : > { %s882_s17 = smov 128   ;;  %s883_s18 = smov 8  }
  0x20   : > { %781 = dma.hbm_to_vmem [thread:$0]  (!%p946_p5), %s1056_s1, 2048, %s215_s27, [#allocation3], %s882_s17, %s882_s17, %s883_s18  }
  0x21   : > { %s836_s23 = scalar_lea.hbm %s1060_s5, 2048 }
  0x22   : > { %p837_p6 = scmp.ne.s32.totalorder %s1060_s5, %s836_s23  ;;  %p843_p8 = scmp.lt.u32.totalorder %s836_s23, %s1060_s5 }
  0x24   : > { %p839_p2 = pnand %p837_p6, %p810_p7 }
  0x26   : > { %p840_p3 = pneg %p839_p2 }
  0x28   : > { %p845_p9 = pnand %p843_p8, %p840_p3 }
  0x2a   : > { %848 = shalt.err (!%p845_p9)
}
  0x2b   : > { %s849_s27 = scalar_lea.vmem %s950_s30, 2048  ;;  %p857_p13 = scmp.lt.s32.totalorder %s950_s30, %s950_s30 }
  0x2c   : > { %p850_p10 = scmp.ne.s32.totalorder %s950_s30, %s849_s27  ;;  %p858_p0 = scmp.lt.s32.totalorder %s849_s27, %s849_s27 }
  0x2e   : > { %p852_p11 = pnand %p850_p10, %p810_p7  ;;  %p859_p1 = por %p858_p0, %p857_p13 }
  0x30   : > { %p853_p12 = pneg %p852_p11 }
  0x32   : > { %p860_p4 = pnand %p859_p1, %p853_p12 }
  0x34   : > { %863 = shalt.err (!%p860_p4)
}
  0x35   : > { %784 = dma.hbm_to_vmem [thread:$0]  (!%p946_p5), %s1060_s5, 2048, %s950_s30, [#allocation5], %s882_s17, %s882_s17, %s883_s18  }
  0x36   : > { %p1067_p6 = scmp.ne.s32.totalorder %s1065_s28, 0 }
  0x37   : > { %p1068_p2 = scmp.eq.s32.totalorder (!%p1067_p6), %s933_s25, 0 }
  0x38   : > { %262 = sbr.rel (%p1067_p6) target bundleno = 716 (0x2cc), region = 48 }
  0x3f   : > { %869 = dma.done.wait (%p1068_p2), [#allocation3], 2048   ;;  %p1069_p7 = pmov %p1068_p2 }
  0x40   : > { %p1070_p3 = pmov %p1068_p2 }
  0x41   : > { %871 = vsyncadd (%p1069_p7), [#allocation3], 4294965248 }
  0x42   : > { %873 = dma.done.wait (%p1070_p3), [#allocation5], 2048   ;;  %p1071_p8 = pmov %p1068_p2 }
  0x43   : > { %v884_v0 = vmov 0.0|0.0   ;;  %vm885_vm0 = vmmov 0   ;;  %v886_v1 = vmov 0.0   ;;  %v305_v2 = vld [vmem:[#allocation2] sm:$0xff]  ;;  %v306_v3 = vld [vmem:[#allocation2 + $0x8] sm:$0xff]  ;;  %v307_v4 = vld [vmem:[#allocation2 + $0x10] sm:$0xff] }
  0x44   : > { %875 = vsyncadd (%p1071_p8), [#allocation5], 4294965248  ;;  %722 = vmatprep.subr.bf16.mxu0 %v884_v0  ;;  %684 = vmatprep.mubr.msk.f32.mxu0 %vm885_vm0, %v886_v1  ;;  %v723_v5 = vpack.c.bf16 %v306_v3, %v305_v2  ;;  %v308_v6 = vld [vmem:[#allocation2 + $0x18] sm:$0xff]  ;;  %v309_v8 = vld [vmem:[#allocation2 + $0x20] sm:$0xff]  ;;  %p296_p5 = scmp.lt.s32.totalorder %s933_s25, 1 }
  0x45   : > { %746 = vmatprep.subr.bf16.mxu1 %v884_v0  ;;  %719 = vmatprep.mubr.msk.f32.mxu1 %vm885_vm0, %v886_v1  ;;  %v726_v7 = vpack.c.bf16 %v308_v6, %v307_v4  ;;  %v310_v9 = vld [vmem:[#allocation2 + $0x28] sm:$0xff]  ;;  %v311_v11 = vld [vmem:[#allocation2 + $0x30] sm:$0xff]  ;;  %v312_v12 = vld [vmem:[#allocation2 + $0x38] sm:$0xff] }
  0x46   : > { %724 = vmatpush3.bf16.msra.mxu0 %v723_v5  ;;  %v729_v10 = vpack.c.bf16 %v310_v9, %v309_v8  ;;  %v732_v13 = vpack.c.bf16 %v312_v12, %v311_v11  ;;  %v313_v14 = vld [vmem:[#allocation2 + $0x40] sm:$0xff]  ;;  %v314_v15 = vld [vmem:[#allocation2 + $0x48] sm:$0xff]  ;;  %v315_v17 = vld [vmem:[#allocation2 + $0x50] sm:$0xff]  ;;  %s1073_s25 = smov (!%p296_p5, %s933_s25), 1 }
  0x47   : > { %725 = vmatprep.subr.bf16.mxu0 %v884_v0  ;;  %v735_v16 = vpack.c.bf16 %v314_v15, %v313_v14  ;;  %v316_v18 = vld [vmem:[#allocation2 + $0x58] sm:$0xff]  ;;  %v317_v20 = vld [vmem:[#allocation2 + $0x60] sm:$0xff]  ;;  %v318_v21 = vld [vmem:[#allocation2 + $0x68] sm:$0xff]  ;;  %s610_s28 = sshll.u32 %s1073_s25, 3 }
  0x48   : > { %v738_v19 = vpack.c.bf16 %v316_v18, %v315_v17  ;;  %v741_v22 = vpack.c.bf16 %v318_v21, %v317_v20  ;;  %v319_v23 = vld [vmem:[#allocation2 + $0x70] sm:$0xff]  ;;  %v320_v24 = vld [vmem:[#allocation2 + $0x78] sm:$0xff]  ;;  %s299_s13 = scalar_lea.vmem %s1055_s0, %s610_s28  ;;  %v432_v27 = vld [vmem:[#allocation4] sm:$0xff]  ;;  %s303_s26 = scalar_lea.vmem %s1062_s7, %s610_s28 }
  0x49   : > { %v744_v25 = vpack.c.bf16 %v320_v24, %v319_v23  ;;  %v304_v26 = vld [vmem:[%s299_s13] sm:$0xff]  ;;  %v433_v28 = vld [vmem:[#allocation4 + $0x8] sm:$0xff]  ;;  %v434_v40 = vld [vmem:[#allocation4 + $0x10] sm:$0xff] }
  0x4a   : > { %727 = vmatpush3.bf16.msra.mxu0 %v726_v7  ;;  %v747_v29 = vpack.c.bf16 %v433_v28, %v432_v27  ;;  %v612_v30 = vld [vmem:[%s1057_s2] ss:$0 sm:$0xff]  ;;  %v435_v41 = vld [vmem:[#allocation4 + $0x18] sm:$0xff]  ;;  %v437_v44 = vld [vmem:[#allocation4 + $0x28] sm:$0xff] }
  0x4b   : > { %728 = vmatprep.subr.bf16.mxu0 %v884_v0  ;;  %v750_v42 = vpack.c.bf16 %v435_v41, %v434_v40  ;;  %v436_v43 = vld [vmem:[#allocation4 + $0x20] sm:$0xff]  ;;  %v438_v46 = vld [vmem:[#allocation4 + $0x30] sm:$0xff]  ;;  %v439_v47 = vld [vmem:[#allocation4 + $0x38] sm:$0xff] }
  0x4c   : > { %748 = vmatpush3.bf16.msra.mxu1 %v747_v29  ;;  %v753_v45 = vpack.c.bf16 %v437_v44, %v436_v43  ;;  %v756_v48 = vpack.c.bf16 %v439_v47, %v438_v46  ;;  %v440_v49 = vld [vmem:[#allocation4 + $0x40] sm:$0xff]  ;;  %v441_v50 = vld [vmem:[#allocation4 + $0x48] sm:$0xff]  ;;  %v442_v52 = vld [vmem:[#allocation4 + $0x50] sm:$0xff] }
  0x4d   : > { %749 = vmatprep.subr.bf16.mxu1 %v884_v0  ;;  %v759_v51 = vpack.c.bf16 %v441_v50, %v440_v49  ;;  %v443_v53 = vld [vmem:[#allocation4 + $0x58] sm:$0xff]  ;;  %v444_v55 = vld [vmem:[#allocation4 + $0x60] sm:$0xff]  ;;  %v445_v56 = vld [vmem:[#allocation4 + $0x68] sm:$0xff] }
  0x4e   : > { %730 = vmatpush3.bf16.msra.mxu0 %v729_v10  ;;  %v762_v54 = vpack.c.bf16 %v443_v53, %v442_v52  ;;  %v765_v57 = vpack.c.bf16 %v445_v56, %v444_v55  ;;  %v446_v58 = vld [vmem:[#allocation4 + $0x70] sm:$0xff]  ;;  %v447_v59 = vld [vmem:[#allocation4 + $0x78] sm:$0xff]  ;;  %v613_v7 = vld [vmem:[%s1058_s3] ss:$0 sm:$0xff] }
  0x4f   : > { %731 = vmatprep.subr.bf16.mxu0 %v884_v0  ;;  %v768_v60 = vpack.c.bf16 %v447_v59, %v446_v58  ;;  %v615_v11 = vld [vmem:[%s1061_s6] ss:$0 sm:$0xff] }
  0x50   : > { %751 = vmatpush3.bf16.msra.mxu1 %v750_v42 }
  0x51   : > { %752 = vmatprep.subr.bf16.mxu1 %v884_v0 }
  0x52   : > { %733 = vmatpush3.bf16.msra.mxu0 %v732_v13 }
  0x53   : > { %734 = vmatprep.subr.bf16.mxu0 %v884_v0 }
  0x54   : > { %754 = vmatpush3.bf16.msra.mxu1 %v753_v45 }
  0x55   : > { %755 = vmatprep.subr.bf16.mxu1 %v884_v0 }
  0x56   : > { %736 = vmatpush3.bf16.msra.mxu0 %v735_v16 }
  0x57   : > { %737 = vmatprep.subr.bf16.mxu0 %v884_v0 }
  0x58   : > { %757 = vmatpush3.bf16.msra.mxu1 %v756_v48 }
  0x59   : > { %758 = vmatprep.subr.bf16.mxu1 %v884_v0 }
  0x5a   : > { %739 = vmatpush3.bf16.msra.mxu0 %v738_v19 }
  0x5b   : > { %740 = vmatprep.subr.bf16.mxu0 %v884_v0 }
  0x5c   : > { %760 = vmatpush3.bf16.msra.mxu1 %v759_v51 }
  0x5d   : > { %761 = vmatprep.subr.bf16.mxu1 %v884_v0 }
  0x5e   : > { %742 = vmatpush3.bf16.msra.mxu0 %v741_v22 }
  0x5f   : > { %743 = vmatprep.subr.bf16.mxu0 %v884_v0 }
  0x60   : > { %763 = vmatpush3.bf16.msra.mxu1 %v762_v54 }
  0x61   : > { %764 = vmatprep.subr.bf16.mxu1 %v884_v0 }
  0x62   : > { %745 = vmatpush3.bf16.msra.mxu0 %v744_v25 }
  0x64   : > { %766 = vmatpush3.bf16.msra.mxu1 %v765_v57 }
  0x65   : > { %685 = vmatmul.mubr.f32.vlgmr.msra.gmra.mrb[0].mxu0 %v304_v26  ;;  %767 = vmatprep.subr.bf16.mxu1 %v884_v0  ;;  %v614_v0 = vld [vmem:[%s1059_s4] ss:$0 sm:$0xff] }
  0x68   : > { %769 = vmatpush3.bf16.msra.mxu1 %v768_v60 }
 0x138   : > { %v394_v31 = vpop.f32.mrb[0].mxu0 }
 0x139   : > { %v395_v32 = vadd.f32 %v612_v30, %v394_v31  ;;  %v686_v33 = vpop.f32.mrb[1].mxu0 }
 0x13b   : > { %v399_v34 = vmul.f32 0.70710677, %v395_v32  ;;  %v398_v36 = vmul.f32 0.5, %v395_v32 }
 0x13d   : > { %804 = verf.f32 %v399_v34 }
 0x147   : > { %v805_v35 = vpop.eup %804 }
 0x148   : > { %v401_v37 = vadd.f32 1.0, %v805_v35 }
 0x14a   : > { %v402_v38 = vmul.f32 %v401_v37, %v398_v36 }
 0x14c   : > { %403 = vadd.xlane.f32.xlu0 %v402_v38  ;;  %v405_v39 = vmul.f32 %v402_v38, %v402_v38 }
 0x150   : > { %406 = vadd.xlane.f32.xlu0 %v405_v39 }
 0x1d9   : > { %v404_v61 = vpop.xlane.xlu0 %403 }
 0x1da   : > { %v408_v62 = vmul.f32 0.015625, %v404_v61 }
 0x1dc   : > { %v410_v1 = vmul.f32 %v408_v62, %v408_v62  ;;  %v412_v5 = vsub.f32 %v402_v38, %v408_v62 }
 0x1dd   : > { %v407_v63 = vpop.xlane.xlu0 %406 }
 0x1de   : > { %v409_v2 = vmul.f32 0.015625, %v407_v63 }
 0x1e0   : > { %v411_v3 = vsub.f32 %v409_v2, %v410_v1 }
 0x1e2   : > { %v413_v4 = vadd.f32 1e-05, %v411_v3 }
 0x1e4   : > { %806 = vrsqrt.f32 %v413_v4 }
 0x1ee   : > { %v807_v6 = vpop.eup %806 }
 0x1ef   : > { %v415_v8 = vmul.f32 %v807_v6, %v412_v5 }
 0x1f1   : > { %v423_v9 = vmul.f32 %v613_v7, %v415_v8 }
 0x1f3   : > { %v431_v10 = vadd.f32 %v614_v0, %v423_v9 }
 0x1f5   : > { %720 = vmatmul.mubr.f32.vlgmr.msra.gmra.mrb[0].mxu1 %v431_v10 }
 0x2c8   : > { %v521_v12 = vpop.f32.mrb[0].mxu1 }
 0x2c9   : > { %v522_v13 = vadd.f32 %v615_v11, %v521_v12  ;;  %v721_v14 = vpop.f32.mrb[1].mxu1 }
 0x2cb   : > { %525 = vst [vmem:[%s303_s26] sm:$0xff] %v522_v13 }
 0x2cc PF: > { %s19_s24 = sadd.s32 1, %s878_s24  }
 0x2cd   : > { %p16_p9 = scmp.ge.s32.totalorder %s19_s24, 4  }
 0x2cf   :  { %18 = sbr.rel (!%p16_p9) target bundleno = 2 (0x2), region = 87 }
 0x2d6   :  { %545 = vsyncpa [#allocation3], 1 }
 0x2d7   :  { %547 = vsyncpa [#allocation3 + $0x1], 1 }
 0x2d8   :  { %548 = vsyncpa [#allocation5], 1 }

// kernel: _fc_forward.1
= control target key start
LH: loop header
LB: loop body
LE: loop exit
PB: predicated region body
PF: predicated region fallthrough
CT: control target
= control target key end

     0   :  { %12 = vsyncpa [#allocation3], 0  ;;  %s1055_s0 = inlined_call_operand.vmem [shape: f32[16,128], index: 0, kind: input, shape index: {}]   ;;  %s1056_s1 = inlined_call_operand.hbm [shape: f32[128,128], index: 1, kind: input, shape index: {}]   ;;  %s1057_s2 = inlined_call_operand.vmem [shape: f32[1,128], index: 2, kind: input, shape index: {}]   ;;  %s1058_s3 = inlined_call_operand.vmem [shape: f32[1,128], index: 3, kind: input, shape index: {}]   ;;  %s1059_s4 = inlined_call_operand.vmem [shape: f32[1,128], index: 4, kind: input, shape index: {}]   ;;  %s1060_s5 = inlined_call_operand.hbm [shape: f32[128,128], index: 5, kind: input, shape index: {}]   ;;  %s1061_s6 = inlined_call_operand.vmem [shape: f32[1,128], index: 6, kind: input, shape index: {}]   ;;  %s1062_s7 = inlined_call_operand.vmem [shape: f32[16,128], index: 7, kind: output, shape index: {}]  }
   0x1   :  { %13 = vsyncpa [#allocation5], 0  ;;  %s927_s24 = smov 0  }
   0x2 LB: > { %s933_s25 = sadd.s32 4294967295, %s878_s24   ;;  %p603_p0 = scmp.ge.s32.totalorder %s878_s24, 1  ;;  %s878_s24 = sphi %s927_s24, %s19_s24  }
   0x3   : > { %p202_p1 = scmp.lt.s32.totalorder %s878_s24, 3  ;;  %s880_s26 = smov [#allocation2]  }
   0x4   : > { %s214_s27 = sshll.u32 %s880_s26, 4  ;;  %p1063_p3 = scmp.eq.s32.totalorder %s933_s25, 0  ;;  %s215_s27 = int_to_ptr.vmem [resolvable:$true] %s214_s27 }
   0x5   : > { %p937_p2 = pnand %p603_p0, %p202_p1  ;;  %s881_s29 = smov [#allocation4]  }
   0x6   : > { %s236_s30 = sshll.u32 %s881_s29, 4  ;;  %s808_s11 = scalar_lea.hbm %s1056_s1, 2048  ;;  %s950_s30 = int_to_ptr.vmem [resolvable:$true] %s236_s30 }
   0x7   : > { %s1065_s28 = scalar_select %p937_p2, 1, 0 }
   0x8   : > { %p778_p4 = pneg %p937_p2  ;;  %p809_p6 = scmp.ne.s32.totalorder %s1056_s1, %s808_s11 }
   0x9   : > { %p815_p10 = scmp.lt.u32.totalorder %s808_s11, %s1056_s1 }
   0xa   : > { %p946_p5 = pnand %p1063_p3, %p778_p4 }
   0xc   : > { %p810_p7 = pneg %p946_p5 }
   0xe   : > { %p811_p8 = pnand %p810_p7, %p809_p6 }
  0x10   : > { %p812_p9 = pneg %p811_p8 }
  0x12   : > { %p817_p11 = pnand %p815_p10, %p812_p9 }
  0x14   : > { %820 = shalt.err (!%p817_p11)
}
  0x15   : > { %s821_s16 = scalar_lea.vmem %s215_s27, 2048  ;;  %p829_p1 = scmp.lt.s32.totalorder %s215_s27, %s215_s27 }
  0x16   : > { %p822_p12 = scmp.ne.s32.totalorder %s215_s27, %s821_s16  ;;  %p830_p4 = scmp.lt.s32.totalorder %s821_s16, %s821_s16 }
  0x18   : > { %p824_p13 = pnand %p822_p12, %p810_p7  ;;  %p831_p3 = por %p830_p4, %p829_p1 }
  0x1a   : > { %p825_p0 = pneg %p824_p13 }
  0x1c   : > { %p832_p2 = pnand %p831_p3, %p825_p0 }
  0x1e   : > { %835 = shalt.err (!%p832_p2)
}
  0x1f   : > { %s882_s17 = smov 128   ;;  %s883_s18 = smov 8  }
  0x20   : > { %781 = dma.hbm_to_vmem [thread:$0]  (!%p946_p5), %s1056_s1, 2048, %s215_s27, [#allocation3], %s882_s17, %s882_s17, %s883_s18  }
  0x21   : > { %s836_s23 = scalar_lea.hbm %s1060_s5, 2048 }
  0x22   : > { %p837_p6 = scmp.ne.s32.totalorder %s1060_s5, %s836_s23  ;;  %p843_p8 = scmp.lt.u32.totalorder %s836_s23, %s1060_s5 }
  0x24   : > { %p839_p2 = pnand %p837_p6, %p810_p7 }
  0x26   : > { %p840_p3 = pneg %p839_p2 }
  0x28   : > { %p845_p9 = pnand %p843_p8, %p840_p3 }
  0x2a   : > { %848 = shalt.err (!%p845_p9)
}
  0x2b   : > { %s849_s27 = scalar_lea.vmem %s950_s30, 2048  ;;  %p857_p13 = scmp.lt.s32.totalorder %s950_s30, %s950_s30 }
  0x2c   : > { %p850_p10 = scmp.ne.s32.totalorder %s950_s30, %s849_s27  ;;  %p858_p0 = scmp.lt.s32.totalorder %s849_s27, %s849_s27 }
  0x2e   : > { %p852_p11 = pnand %p850_p10, %p810_p7  ;;  %p859_p1 = por %p858_p0, %p857_p13 }
  0x30   : > { %p853_p12 = pneg %p852_p11 }
  0x32   : > { %p860_p4 = pnand %p859_p1, %p853_p12 }
  0x34   : > { %863 = shalt.err (!%p860_p4)
}
  0x35   : > { %784 = dma.hbm_to_vmem [thread:$0]  (!%p946_p5), %s1060_s5, 2048, %s950_s30, [#allocation5], %s882_s17, %s882_s17, %s883_s18  }
  0x36   : > { %p1067_p6 = scmp.ne.s32.totalorder %s1065_s28, 0 }
  0x37   : > { %p1068_p2 = scmp.eq.s32.totalorder (!%p1067_p6), %s933_s25, 0 }
  0x38   : > { %262 = sbr.rel (%p1067_p6) target bundleno = 716 (0x2cc), region = 48 }
  0x3f   : > { %869 = dma.done.wait (%p1068_p2), [#allocation3], 2048   ;;  %p1069_p7 = pmov %p1068_p2 }
  0x40   : > { %p1070_p3 = pmov %p1068_p2 }
  0x41   : > { %871 = vsyncadd (%p1069_p7), [#allocation3], 4294965248 }
  0x42   : > { %873 = dma.done.wait (%p1070_p3), [#allocation5], 2048   ;;  %p1071_p8 = pmov %p1068_p2 }
  0x43   : > { %v884_v0 = vmov 0.0|0.0   ;;  %vm885_vm0 = vmmov 0   ;;  %v886_v1 = vmov 0.0   ;;  %v305_v2 = vld [vmem:[#allocation2] sm:$0xff]  ;;  %v306_v3 = vld [vmem:[#allocation2 + $0x8] sm:$0xff]  ;;  %v307_v4 = vld [vmem:[#allocation2 + $0x10] sm:$0xff] }
  0x44   : > { %875 = vsyncadd (%p1071_p8), [#allocation5], 4294965248  ;;  %722 = vmatprep.subr.bf16.mxu0 %v884_v0  ;;  %684 = vmatprep.mubr.msk.f32.mxu0 %vm885_vm0, %v886_v1  ;;  %v723_v5 = vpack.c.bf16 %v306_v3, %v305_v2  ;;  %v308_v6 = vld [vmem:[#allocation2 + $0x18] sm:$0xff]  ;;  %v309_v8 = vld [vmem:[#allocation2 + $0x20] sm:$0xff]  ;;  %p296_p5 = scmp.lt.s32.totalorder %s933_s25, 1 }
  0x45   : > { %746 = vmatprep.subr.bf16.mxu1 %v884_v0  ;;  %719 = vmatprep.mubr.msk.f32.mxu1 %vm885_vm0, %v886_v1  ;;  %v726_v7 = vpack.c.bf16 %v308_v6, %v307_v4  ;;  %v310_v9 = vld [vmem:[#allocation2 + $0x28] sm:$0xff]  ;;  %v311_v11 = vld [vmem:[#allocation2 + $0x30] sm:$0xff]  ;;  %v312_v12 = vld [vmem:[#allocation2 + $0x38] sm:$0xff] }
  0x46   : > { %724 = vmatpush3.bf16.msra.mxu0 %v723_v5  ;;  %v729_v10 = vpack.c.bf16 %v310_v9, %v309_v8  ;;  %v732_v13 = vpack.c.bf16 %v312_v12, %v311_v11  ;;  %v313_v14 = vld [vmem:[#allocation2 + $0x40] sm:$0xff]  ;;  %v314_v15 = vld [vmem:[#allocation2 + $0x48] sm:$0xff]  ;;  %v315_v17 = vld [vmem:[#allocation2 + $0x50] sm:$0xff]  ;;  %s1073_s25 = smov (!%p296_p5, %s933_s25), 1 }
  0x47   : > { %725 = vmatprep.subr.bf16.mxu0 %v884_v0  ;;  %v735_v16 = vpack.c.bf16 %v314_v15, %v313_v14  ;;  %v316_v18 = vld [vmem:[#allocation2 + $0x58] sm:$0xff]  ;;  %v317_v20 = vld [vmem:[#allocation2 + $0x60] sm:$0xff]  ;;  %v318_v21 = vld [vmem:[#allocation2 + $0x68] sm:$0xff]  ;;  %s610_s28 = sshll.u32 %s1073_s25, 3 }
  0x48   : > { %v738_v19 = vpack.c.bf16 %v316_v18, %v315_v17  ;;  %v741_v22 = vpack.c.bf16 %v318_v21, %v317_v20  ;;  %v319_v23 = vld [vmem:[#allocation2 + $0x70] sm:$0xff]  ;;  %v320_v24 = vld [vmem:[#allocation2 + $0x78] sm:$0xff]  ;;  %s299_s13 = scalar_lea.vmem %s1055_s0, %s610_s28  ;;  %v432_v27 = vld [vmem:[#allocation4] sm:$0xff]  ;;  %s303_s26 = scalar_lea.vmem %s1062_s7, %s610_s28 }
  0x49   : > { %v744_v25 = vpack.c.bf16 %v320_v24, %v319_v23  ;;  %v304_v26 = vld [vmem:[%s299_s13] sm:$0xff]  ;;  %v433_v28 = vld [vmem:[#allocation4 + $0x8] sm:$0xff]  ;;  %v434_v40 = vld [vmem:[#allocation4 + $0x10] sm:$0xff] }
  0x4a   : > { %727 = vmatpush3.bf16.msra.mxu0 %v726_v7  ;;  %v747_v29 = vpack.c.bf16 %v433_v28, %v432_v27  ;;  %v612_v30 = vld [vmem:[%s1057_s2] ss:$0 sm:$0xff]  ;;  %v435_v41 = vld [vmem:[#allocation4 + $0x18] sm:$0xff]  ;;  %v437_v44 = vld [vmem:[#allocation4 + $0x28] sm:$0xff] }
  0x4b   : > { %728 = vmatprep.subr.bf16.mxu0 %v884_v0  ;;  %v750_v42 = vpack.c.bf16 %v435_v41, %v434_v40  ;;  %v436_v43 = vld [vmem:[#allocation4 + $0x20] sm:$0xff]  ;;  %v438_v46 = vld [vmem:[#allocation4 + $0x30] sm:$0xff]  ;;  %v439_v47 = vld [vmem:[#allocation4 + $0x38] sm:$0xff] }
  0x4c   : > { %748 = vmatpush3.bf16.msra.mxu1 %v747_v29  ;;  %v753_v45 = vpack.c.bf16 %v437_v44, %v436_v43  ;;  %v756_v48 = vpack.c.bf16 %v439_v47, %v438_v46  ;;  %v440_v49 = vld [vmem:[#allocation4 + $0x40] sm:$0xff]  ;;  %v441_v50 = vld [vmem:[#allocation4 + $0x48] sm:$0xff]  ;;  %v442_v52 = vld [vmem:[#allocation4 + $0x50] sm:$0xff] }
  0x4d   : > { %749 = vmatprep.subr.bf16.mxu1 %v884_v0  ;;  %v759_v51 = vpack.c.bf16 %v441_v50, %v440_v49  ;;  %v443_v53 = vld [vmem:[#allocation4 + $0x58] sm:$0xff]  ;;  %v444_v55 = vld [vmem:[#allocation4 + $0x60] sm:$0xff]  ;;  %v445_v56 = vld [vmem:[#allocation4 + $0x68] sm:$0xff] }
  0x4e   : > { %730 = vmatpush3.bf16.msra.mxu0 %v729_v10  ;;  %v762_v54 = vpack.c.bf16 %v443_v53, %v442_v52  ;;  %v765_v57 = vpack.c.bf16 %v445_v56, %v444_v55  ;;  %v446_v58 = vld [vmem:[#allocation4 + $0x70] sm:$0xff]  ;;  %v447_v59 = vld [vmem:[#allocation4 + $0x78] sm:$0xff]  ;;  %v613_v7 = vld [vmem:[%s1058_s3] ss:$0 sm:$0xff] }
  0x4f   : > { %731 = vmatprep.subr.bf16.mxu0 %v884_v0  ;;  %v768_v60 = vpack.c.bf16 %v447_v59, %v446_v58  ;;  %v615_v11 = vld [vmem:[%s1061_s6] ss:$0 sm:$0xff] }
  0x50   : > { %751 = vmatpush3.bf16.msra.mxu1 %v750_v42 }
  0x51   : > { %752 = vmatprep.subr.bf16.mxu1 %v884_v0 }
  0x52   : > { %733 = vmatpush3.bf16.msra.mxu0 %v732_v13 }
  0x53   : > { %734 = vmatprep.subr.bf16.mxu0 %v884_v0 }
  0x54   : > { %754 = vmatpush3.bf16.msra.mxu1 %v753_v45 }
  0x55   : > { %755 = vmatprep.subr.bf16.mxu1 %v884_v0 }
  0x56   : > { %736 = vmatpush3.bf16.msra.mxu0 %v735_v16 }
  0x57   : > { %737 = vmatprep.subr.bf16.mxu0 %v884_v0 }
  0x58   : > { %757 = vmatpush3.bf16.msra.mxu1 %v756_v48 }
  0x59   : > { %758 = vmatprep.subr.bf16.mxu1 %v884_v0 }
  0x5a   : > { %739 = vmatpush3.bf16.msra.mxu0 %v738_v19 }
  0x5b   : > { %740 = vmatprep.subr.bf16.mxu0 %v884_v0 }
  0x5c   : > { %760 = vmatpush3.bf16.msra.mxu1 %v759_v51 }
  0x5d   : > { %761 = vmatprep.subr.bf16.mxu1 %v884_v0 }
  0x5e   : > { %742 = vmatpush3.bf16.msra.mxu0 %v741_v22 }
  0x5f   : > { %743 = vmatprep.subr.bf16.mxu0 %v884_v0 }
  0x60   : > { %763 = vmatpush3.bf16.msra.mxu1 %v762_v54 }
  0x61   : > { %764 = vmatprep.subr.bf16.mxu1 %v884_v0 }
  0x62   : > { %745 = vmatpush3.bf16.msra.mxu0 %v744_v25 }
  0x64   : > { %766 = vmatpush3.bf16.msra.mxu1 %v765_v57 }
  0x65   : > { %685 = vmatmul.mubr.f32.vlgmr.msra.gmra.mrb[0].mxu0 %v304_v26  ;;  %767 = vmatprep.subr.bf16.mxu1 %v884_v0  ;;  %v614_v0 = vld [vmem:[%s1059_s4] ss:$0 sm:$0xff] }
  0x68   : > { %769 = vmatpush3.bf16.msra.mxu1 %v768_v60 }
 0x138   : > { %v394_v31 = vpop.f32.mrb[0].mxu0 }
 0x139   : > { %v395_v32 = vadd.f32 %v612_v30, %v394_v31  ;;  %v686_v33 = vpop.f32.mrb[1].mxu0 }
 0x13b   : > { %v399_v34 = vmul.f32 0.70710677, %v395_v32  ;;  %v398_v36 = vmul.f32 0.5, %v395_v32 }
 0x13d   : > { %804 = verf.f32 %v399_v34 }
 0x147   : > { %v805_v35 = vpop.eup %804 }
 0x148   : > { %v401_v37 = vadd.f32 1.0, %v805_v35 }
 0x14a   : > { %v402_v38 = vmul.f32 %v401_v37, %v398_v36 }
 0x14c   : > { %403 = vadd.xlane.f32.xlu0 %v402_v38  ;;  %v405_v39 = vmul.f32 %v402_v38, %v402_v38 }
 0x150   : > { %406 = vadd.xlane.f32.xlu0 %v405_v39 }
 0x1d9   : > { %v404_v61 = vpop.xlane.xlu0 %403 }
 0x1da   : > { %v408_v62 = vmul.f32 0.015625, %v404_v61 }
 0x1dc   : > { %v410_v1 = vmul.f32 %v408_v62, %v408_v62  ;;  %v412_v5 = vsub.f32 %v402_v38, %v408_v62 }
 0x1dd   : > { %v407_v63 = vpop.xlane.xlu0 %406 }
 0x1de   : > { %v409_v2 = vmul.f32 0.015625, %v407_v63 }
 0x1e0   : > { %v411_v3 = vsub.f32 %v409_v2, %v410_v1 }
 0x1e2   : > { %v413_v4 = vadd.f32 1e-05, %v411_v3 }
 0x1e4   : > { %806 = vrsqrt.f32 %v413_v4 }
 0x1ee   : > { %v807_v6 = vpop.eup %806 }
 0x1ef   : > { %v415_v8 = vmul.f32 %v807_v6, %v412_v5 }
 0x1f1   : > { %v423_v9 = vmul.f32 %v613_v7, %v415_v8 }
 0x1f3   : > { %v431_v10 = vadd.f32 %v614_v0, %v423_v9 }
 0x1f5   : > { %720 = vmatmul.mubr.f32.vlgmr.msra.gmra.mrb[0].mxu1 %v431_v10 }
 0x2c8   : > { %v521_v12 = vpop.f32.mrb[0].mxu1 }
 0x2c9   : > { %v522_v13 = vadd.f32 %v615_v11, %v521_v12  ;;  %v721_v14 = vpop.f32.mrb[1].mxu1 }
 0x2cb   : > { %525 = vst [vmem:[%s303_s26] sm:$0xff] %v522_v13 }
 0x2cc PF: > { %s19_s24 = sadd.s32 1, %s878_s24  }
 0x2cd   : > { %p16_p9 = scmp.ge.s32.totalorder %s19_s24, 4  }
 0x2cf   :  { %18 = sbr.rel (!%p16_p9) target bundleno = 2 (0x2), region = 87 }
 0x2d6   :  { %545 = vsyncpa [#allocation3], 1 }
 0x2d7   :  { %547 = vsyncpa [#allocation3 + $0x1], 1 }
 0x2d8   :  { %548 = vsyncpa [#allocation5], 1 }

</bundles_post_ra>
